<compile_context>
chip_gen: v7x
topology: tpu7x:2x2x1
jax: 0.10.0
libtpu: 0.0.40
codegen_flags: <defaults>
</compile_context>

<pallas_src>
import functools

import jax
import jax.numpy as jnp
from jax import lax
from jax.experimental import pallas as pl
from jax.experimental.pallas import tpu as pltpu

LANE = 128       # TPU lane width = padded hidden width = fused-head width
P_OFF = 16       # slab lanes [P_OFF, P_OFF + A)  hold the softmax probs
X_OFF = 64       # slab lanes [X_OFF, X_OFF + H)  hold the pre_embedding
# slab lanes 0..4 hold: value, action_log_prob, action, entropy, perplexity


def policy_kernel(obs_ref, par_ref, slab_ref, *, d_pad, num_actions):
    # ---- unpack the single packed parameter slab (static, tile-aligned views)
    wp = par_ref[0:d_pad, :]                              # perception W [Dp,128]
    wh = par_ref[d_pad:d_pad + LANE, :]                   # fused head W [128,128]
    bp = par_ref[d_pad + LANE:d_pad + LANE + 1, :]        # perception b [1,128]
    bh = par_ref[d_pad + LANE + 1:d_pad + LANE + 2, :]    # fused head b [1,128]

    # ---- perception (synthetic stand-in): Linear + ReLU ----------------------
    # hidden units live at lanes X_OFF..X_OFF+H-1; all other lanes are exactly 0
    x = jnp.maximum(
        jnp.dot(obs_ref[...], wp, preferred_element_type=jnp.float32) + bp, 0.0)

    # ---- fused heads: ONE [128,128] MXU matmul --------------------------------
    # lane 0 -> critic_linear (value); lanes P_OFF..P_OFF+A-1 -> Categorical logits
    heads = jnp.dot(x, wh, preferred_element_type=jnp.float32) + bh      # [B,128]

    col = lax.broadcasted_iota(jnp.int32, heads.shape, 1)
    valid = (col >= P_OFF) & (col < P_OFF + num_actions)

    value = jnp.sum(jnp.where(col == 0, heads, 0.0), axis=-1, keepdims=True)

    # ---- softmax over the valid logit lanes (exact: probs sum to 1) ----------
    logits = jnp.where(valid, heads, jnp.float32(-1e30))
    m = jnp.max(logits, axis=-1, keepdims=True)
    z = logits - m
    e = jnp.where(valid, jnp.exp(z), 0.0)
    s = jnp.sum(e, axis=-1, keepdims=True)
    probs = e / s                          # exact division; padded lanes stay 0
    logp = z - jnp.log(s)

    # ---- deterministic action = dist.mode() = argmax (first-index tie-break) -
    action = jnp.min(jnp.where(valid & (logits == m), col - P_OFF, num_actions),
                     axis=-1, keepdims=True)             # [B,1] int32, 0-based

    # ---- action_log_probs = log_softmax(logits)[action] ----------------------
    chosen = jnp.sum(jnp.where(col == action + P_OFF, logp, 0.0),
                     axis=-1, keepdims=True)

    # ---- entropy (mean over batch) and perplexity -----------------------------
    ent_row = -jnp.sum(jnp.where(valid, probs * logp, 0.0),
                       axis=-1, keepdims=True)           # [B,1]
    ent = jnp.mean(ent_row, keepdims=True)               # [1,1]
    perp = jnp.exp(ent)                                  # [1,1]

    # ---- pack everything into one lane-dense [B,128] slab ---------------------
    f32 = jnp.float32
    scalars = jnp.where(col == 0, value,
              jnp.where(col == 1, chosen,
              jnp.where(col == 2, action.astype(f32),
              jnp.where(col == 3, ent,
              jnp.where(col == 4, perp, f32(0.0))))))
    # scalars (lanes 0..4), probs (lanes P_OFF..), x (lanes X_OFF..) occupy
    # disjoint lanes and are exactly zero elsewhere -> plain adds.
    slab_ref[...] = scalars + probs + x


def pack_params(params):
    """One-time fusion/padding of all parameters into a single [R,128] slab.

    Row layout (rows padded to multiples of 8):
      rows 0 .. Dp-1          perception weight  (columns X_OFF..X_OFF+H-1)
      rows Dp .. Dp+127       fused head weight  (col 0 = critic, P_OFF.. = dist)
      row  Dp+128             perception bias
      row  Dp+129             fused head bias (bc / ba folded in)
    """
    wp, bp, wc, bc, wa, ba = params
    D, H = wp.shape
    A = wa.shape[1]
    assert P_OFF >= 5 and P_OFF + A <= X_OFF and X_OFF + H <= LANE, \
        "slab packing needs 5 scalars + A probs + H hidden to fit 128 lanes"
    assert A < (1 << 24), "action is round-tripped through f32 in the slab"

    Dp = ((D + 7) // 8) * 8
    R = ((Dp + LANE + 2 + 7) // 8) * 8

    par = jnp.zeros((R, LANE), jnp.float32)
    par = par.at[:D, X_OFF:X_OFF + H].set(wp)                          # perception W
    par = par.at[Dp + X_OFF:Dp + X_OFF + H, 0:1].set(wc)               # critic col
    par = par.at[Dp + X_OFF:Dp + X_OFF + H, P_OFF:P_OFF + A].set(wa)   # dist cols
    par = par.at[Dp + LANE, X_OFF:X_OFF + H].set(bp[0])                # perception b
    par = par.at[Dp + LANE + 1, 0:1].set(bc[0])                        # critic b
    par = par.at[Dp + LANE + 1, P_OFF:P_OFF + A].set(ba[0])            # dist b
    # NOTE: all padded entries must stay exactly zero (softmax-mask invariant).
    return par, D, Dp, H, A


def policy_act(obs, packed):
    """Runs PolicyWithBase.act(observations, deterministic=True)."""
    par, D, Dp, H, A = packed
    B = obs.shape[0]
    if Dp != D:
        obs = jnp.pad(obs, ((0, 0), (0, Dp - D)))

    def fullspec(shape):
        return pl.BlockSpec(shape, lambda: tuple(0 for _ in shape))

    cost = pl.CostEstimate(
        flops=2 * B * Dp * LANE + 2 * B * LANE * LANE,
        transcendentals=B * LANE + 2 * B + 1,            # exp lanes + log + exp
        bytes_accessed=4 * (B * Dp + par.size + B * LANE),
    )

    slab = pl.pallas_call(
        functools.partial(policy_kernel, d_pad=Dp, num_actions=A),
        out_shape=jax.ShapeDtypeStruct((B, LANE), jnp.float32),
        grid=(),
        in_specs=[fullspec(obs.shape), fullspec(par.shape)],
        out_specs=fullspec((B, LANE)),
        compiler_params=pltpu.CompilerParams(vmem_limit_bytes=32 << 20),
        cost_estimate=cost,
    )(obs, par)

    # cheap slicing / casting outside the kernel
    value = slab[:, 0:1]
    action_log_probs = slab[:, 1:2]
    action = slab[:, 2:3].astype(jnp.int32)              # exact: small ints in f32
    entropy = slab[0:1, 3:4]
    perplexity = slab[0:1, 4:5]
    probs = slab[:, P_OFF:P_OFF + A]
    pre_embedding = slab[:, X_OFF:X_OFF + H]
    return value, action, action_log_probs, probs, entropy, perplexity, pre_embedding


def make_params(key, obs_dim, hidden, num_actions):
    """Deterministic synthetic params mirroring PolicyWithBase.__init__:
       orthogonal weight init, zero bias (init_ = orthogonal / constant_(0))."""
    k1, k2, k3 = jax.random.split(key, 3)
    ortho = jax.nn.initializers.orthogonal()
    ortho_small = jax.nn.initializers.orthogonal(scale=0.01)   # Categorical gain
    wp = ortho(k1, (obs_dim, hidden), jnp.float32)             # perception stand-in
    bp = jnp.zeros((1, hidden), jnp.float32)
    wc = ortho(k2, (hidden, 1), jnp.float32)                   # critic_linear
    bc = jnp.zeros((1, 1), jnp.float32)
    wa = ortho_small(k3, (hidden, num_actions), jnp.float32)   # dist (Categorical)
    ba = jnp.zeros((1, num_actions), jnp.float32)
    return wp, bp, wc, bc, wa, ba


if __name__ == "__main__":
    B, D_OBS, HIDDEN, N_ACT = 8, 32, 32, 16

    key = jax.random.PRNGKey(0)
    k_obs, k_par = jax.random.split(key)
    obs = jax.random.normal(k_obs, (B, D_OBS), jnp.float32)
    params = make_params(k_par, D_OBS, HIDDEN, N_ACT)
    packed = pack_params(params)

    value, action, action_log_probs, probs, entropy, perplexity, pre_emb = \
        jax.block_until_ready(policy_act(obs, packed))

    # lightweight reference check in plain JAX
    wp, bp, wc, bc, wa, ba = params
    x_ref = jnp.maximum(obs @ wp + bp, 0.0)
    v_ref = x_ref @ wc + bc
    logits_ref = x_ref @ wa + ba
    lp_ref = jax.nn.log_softmax(logits_ref, axis=-1)
    p_ref = jax.nn.softmax(logits_ref, axis=-1)
    a_ref = jnp.argmax(logits_ref, axis=-1, keepdims=True).astype(jnp.int32)
    alp_ref = jnp.take_along_axis(lp_ref, a_ref, axis=-1)
    ent_ref = jnp.mean(-jnp.sum(p_ref * lp_ref, axis=-1))

    assert jnp.allclose(value, v_ref, atol=1e-5), "value mismatch"
    assert jnp.array_equal(action, a_ref), "action mismatch"
    assert jnp.allclose(action_log_probs, alp_ref, atol=1e-5), "log_probs mismatch"
    assert jnp.allclose(probs, p_ref, atol=1e-5), "probs mismatch"
    assert jnp.allclose(entropy[0, 0], ent_ref, atol=1e-4), "entropy mismatch"
    assert jnp.allclose(perplexity[0, 0], jnp.exp(ent_ref), atol=1e-4), "perplexity mismatch"
    assert jnp.allclose(pre_emb, x_ref, atol=1e-5), "pre_embedding mismatch"

    print("KERNEL_OK")
</pallas_src>

<mosaic_0001>
module attributes {stable_mosaic.version = 11 : i64} {
  func.func @policy_kernel(%arg0: memref<8x32xf32, #tpu.memory_space<vmem>>, %arg1: memref<168x128xf32, #tpu.memory_space<vmem>>, %arg2: memref<8x128xf32, #tpu.memory_space<vmem>>) attributes {dimension_semantics = [], scalar_prefetch = 0 : i64, scratch_operands = 0 : i64, tpu.core_type = #tpu.core_type<tc>} {
    %c0 = arith.constant 0 : index
    %c0_0 = arith.constant 0 : index
    %0 = vector.load %arg1[%c0, %c0_0] : memref<168x128xf32, #tpu.memory_space<vmem>>, vector<32x128xf32>
    %c32 = arith.constant 32 : index
    %c0_1 = arith.constant 0 : index
    %1 = vector.load %arg1[%c32, %c0_1] : memref<168x128xf32, #tpu.memory_space<vmem>>, vector<128x128xf32>
    %c160 = arith.constant 160 : index
    %c0_2 = arith.constant 0 : index
    %2 = vector.load %arg1[%c160, %c0_2] : memref<168x128xf32, #tpu.memory_space<vmem>>, vector<1x128xf32>
    %c161 = arith.constant 161 : index
    %c0_3 = arith.constant 0 : index
    %3 = vector.load %arg1[%c161, %c0_3] : memref<168x128xf32, #tpu.memory_space<vmem>>, vector<1x128xf32>
    %c0_4 = arith.constant 0 : index
    %c0_5 = arith.constant 0 : index
    %4 = vector.load %arg0[%c0_4, %c0_5] : memref<8x32xf32, #tpu.memory_space<vmem>>, vector<8x32xf32>
    %cst = arith.constant dense<0.000000e+00> : vector<8x128xf32>
    %5 = tpu.matmul %4, %0, %cst {dimension_numbers = #tpu.dot_dimension_numbers<[1], [0], [0], [1], [0, 0, 1, 1], [], []>} : vector<8x32xf32>, vector<32x128xf32>, vector<8x128xf32> -> vector<8x128xf32>
    %6 = vector.broadcast %2 : vector<1x128xf32> to vector<8x128xf32>
    %7 = arith.addf %5, %6 : vector<8x128xf32>
    %cst_6 = arith.constant 0.000000e+00 : f32
    %8 = vector.broadcast %cst_6 : f32 to vector<8x128xf32>
    %9 = arith.maximumf %7, %8 : vector<8x128xf32>
    %cst_7 = arith.constant dense<0.000000e+00> : vector<8x128xf32>
    %10 = tpu.matmul %9, %1, %cst_7 {dimension_numbers = #tpu.dot_dimension_numbers<[1], [0], [0], [1], [0, 0, 1, 1], [], []>} : vector<8x128xf32>, vector<128x128xf32>, vector<8x128xf32> -> vector<8x128xf32>
    %11 = vector.broadcast %3 : vector<1x128xf32> to vector<8x128xf32>
    %12 = arith.addf %10, %11 : vector<8x128xf32>
    %13 = tpu.iota {dimensions = array<i32: 1>} : vector<8x128xi32>
    %c16_i32 = arith.constant 16 : i32
    %14 = vector.broadcast %c16_i32 : i32 to vector<8x128xi32>
    %15 = arith.cmpi sge, %13, %14 : vector<8x128xi32>
    %c32_i32 = arith.constant 32 : i32
    %16 = vector.broadcast %c32_i32 : i32 to vector<8x128xi32>
    %17 = arith.cmpi slt, %13, %16 : vector<8x128xi32>
    %18 = arith.andi %15, %17 : vector<8x128xi1>
    %c0_i32 = arith.constant 0 : i32
    %19 = vector.broadcast %c0_i32 : i32 to vector<8x128xi32>
    %20 = arith.cmpi eq, %13, %19 : vector<8x128xi32>
    %cst_8 = arith.constant 0.000000e+00 : f32
    %21 = vector.broadcast %cst_8 : f32 to vector<8x128xf32>
    %22 = arith.select %20, %12, %21 : vector<8x128xi1>, vector<8x128xf32>
    %cst_9 = arith.constant dense<0.000000e+00> : vector<8xf32>
    %23 = vector.multi_reduction <add>, %22, %cst_9 [1] : vector<8x128xf32> to vector<8xf32>
    %24 = vector.shape_cast %23 : vector<8xf32> to vector<8x1xf32>
    %cst_10 = arith.constant -1.000000e+30 : f32
    %25 = vector.broadcast %cst_10 : f32 to vector<8x128xf32>
    %26 = arith.select %18, %12, %25 : vector<8x128xi1>, vector<8x128xf32>
    %cst_11 = arith.constant dense<0xFF800000> : vector<8xf32>
    %27 = vector.multi_reduction <maximumf>, %26, %cst_11 [1] : vector<8x128xf32> to vector<8xf32>
    %28 = vector.shape_cast %27 : vector<8xf32> to vector<8x1xf32>
    %29 = vector.broadcast %28 : vector<8x1xf32> to vector<8x128xf32>
    %30 = arith.subf %26, %29 : vector<8x128xf32>
    %31 = math.exp %30 : vector<8x128xf32>
    %cst_12 = arith.constant 0.000000e+00 : f32
    %32 = vector.broadcast %cst_12 : f32 to vector<8x128xf32>
    %33 = arith.select %18, %31, %32 : vector<8x128xi1>, vector<8x128xf32>
    %cst_13 = arith.constant dense<0.000000e+00> : vector<8xf32>
    %34 = vector.multi_reduction <add>, %33, %cst_13 [1] : vector<8x128xf32> to vector<8xf32>
    %35 = vector.shape_cast %34 : vector<8xf32> to vector<8x1xf32>
    %36 = vector.broadcast %35 : vector<8x1xf32> to vector<8x128xf32>
    %37 = arith.divf %33, %36 : vector<8x128xf32>
    %38 = math.log %35 : vector<8x1xf32>
    %39 = vector.broadcast %38 : vector<8x1xf32> to vector<8x128xf32>
    %40 = arith.subf %30, %39 : vector<8x128xf32>
    %41 = vector.broadcast %28 : vector<8x1xf32> to vector<8x128xf32>
    %42 = arith.cmpf oeq, %26, %41 : vector<8x128xf32>
    %43 = arith.andi %18, %42 : vector<8x128xi1>
    %c16_i32_14 = arith.constant 16 : i32
    %44 = vector.broadcast %c16_i32_14 : i32 to vector<8x128xi32>
    %45 = arith.subi %13, %44 : vector<8x128xi32>
    %c16_i32_15 = arith.constant 16 : i32
    %46 = vector.broadcast %c16_i32_15 : i32 to vector<8x128xi32>
    %47 = arith.select %43, %45, %46 : vector<8x128xi1>, vector<8x128xi32>
    %cst_16 = arith.constant dense<2147483647> : vector<8xi32>
    %48 = vector.multi_reduction <minsi>, %47, %cst_16 [1] : vector<8x128xi32> to vector<8xi32>
    %49 = vector.shape_cast %48 : vector<8xi32> to vector<8x1xi32>
    %c16_i32_17 = arith.constant 16 : i32
    %50 = vector.broadcast %c16_i32_17 : i32 to vector<8x1xi32>
    %51 = arith.addi %49, %50 : vector<8x1xi32>
    %52 = vector.broadcast %51 : vector<8x1xi32> to vector<8x128xi32>
    %53 = arith.cmpi eq, %13, %52 : vector<8x128xi32>
    %cst_18 = arith.constant 0.000000e+00 : f32
    %54 = vector.broadcast %cst_18 : f32 to vector<8x128xf32>
    %55 = arith.select %53, %40, %54 : vector<8x128xi1>, vector<8x128xf32>
    %cst_19 = arith.constant dense<0.000000e+00> : vector<8xf32>
    %56 = vector.multi_reduction <add>, %55, %cst_19 [1] : vector<8x128xf32> to vector<8xf32>
    %57 = vector.shape_cast %56 : vector<8xf32> to vector<8x1xf32>
    %58 = arith.mulf %37, %40 : vector<8x128xf32>
    %cst_20 = arith.constant 0.000000e+00 : f32
    %59 = vector.broadcast %cst_20 : f32 to vector<8x128xf32>
    %60 = arith.select %18, %58, %59 : vector<8x128xi1>, vector<8x128xf32>
    %cst_21 = arith.constant dense<0.000000e+00> : vector<8xf32>
    %61 = vector.multi_reduction <add>, %60, %cst_21 [1] : vector<8x128xf32> to vector<8xf32>
    %62 = vector.shape_cast %61 : vector<8xf32> to vector<8x1xf32>
    %cst_22 = arith.constant 0.000000e+00 : f32
    %63 = vector.broadcast %cst_22 : f32 to vector<8x1xf32>
    %64 = arith.subf %63, %62 : vector<8x1xf32>
    %65 = vector.shape_cast %64 : vector<8x1xf32> to vector<1x8x1xf32>
    %cst_23 = arith.constant dense<0.000000e+00> : vector<1xf32>
    %66 = vector.multi_reduction <add>, %65, %cst_23 [1, 2] : vector<1x8x1xf32> to vector<1xf32>
    %67 = vector.shape_cast %66 : vector<1xf32> to vector<1x1x1xf32>
    %68 = vector.extract %67[0, 0, 0] : f32 from vector<1x1x1xf32>
    %69 = vector.broadcast %68 : f32 to vector<1x1xf32>
    %cst_24 = arith.constant 8.000000e+00 : f32
    %70 = vector.broadcast %cst_24 : f32 to vector<1x1xf32>
    %71 = arith.divf %69, %70 : vector<1x1xf32>
    %72 = math.exp %71 : vector<1x1xf32>
    %c0_i32_25 = arith.constant 0 : i32
    %73 = vector.broadcast %c0_i32_25 : i32 to vector<8x128xi32>
    %74 = arith.cmpi eq, %13, %73 : vector<8x128xi32>
    %c1_i32 = arith.constant 1 : i32
    %75 = vector.broadcast %c1_i32 : i32 to vector<8x128xi32>
    %76 = arith.cmpi eq, %13, %75 : vector<8x128xi32>
    %c2_i32 = arith.constant 2 : i32
    %77 = vector.broadcast %c2_i32 : i32 to vector<8x128xi32>
    %78 = arith.cmpi eq, %13, %77 : vector<8x128xi32>
    %79 = arith.sitofp %49 : vector<8x1xi32> to vector<8x1xf32>
    %c3_i32 = arith.constant 3 : i32
    %80 = vector.broadcast %c3_i32 : i32 to vector<8x128xi32>
    %81 = arith.cmpi eq, %13, %80 : vector<8x128xi32>
    %c4_i32 = arith.constant 4 : i32
    %82 = vector.broadcast %c4_i32 : i32 to vector<8x128xi32>
    %83 = arith.cmpi eq, %13, %82 : vector<8x128xi32>
    %cst_26 = arith.constant 0.000000e+00 : f32
    %84 = vector.shape_cast %72 : vector<1x1xf32> to vector<1x1xf32>
    %85 = vector.broadcast %84 : vector<1x1xf32> to vector<8x128xf32>
    %86 = vector.broadcast %cst_26 : f32 to vector<8x128xf32>
    %87 = arith.select %83, %85, %86 : vector<8x128xi1>, vector<8x128xf32>
    %88 = vector.shape_cast %71 : vector<1x1xf32> to vector<1x1xf32>
    %89 = vector.broadcast %88 : vector<1x1xf32> to vector<8x128xf32>
    %90 = arith.select %81, %89, %87 : vector<8x128xi1>, vector<8x128xf32>
    %91 = vector.shape_cast %79 : vector<8x1xf32> to vector<8x1xf32>
    %92 = vector.broadcast %91 : vector<8x1xf32> to vector<8x128xf32>
    %93 = arith.select %78, %92, %90 : vector<8x128xi1>, vector<8x128xf32>
    %94 = vector.shape_cast %57 : vector<8x1xf32> to vector<8x1xf32>
    %95 = vector.broadcast %94 : vector<8x1xf32> to vector<8x128xf32>
    %96 = arith.select %76, %95, %93 : vector<8x128xi1>, vector<8x128xf32>
    %97 = vector.shape_cast %24 : vector<8x1xf32> to vector<8x1xf32>
    %98 = vector.broadcast %97 : vector<8x1xf32> to vector<8x128xf32>
    %99 = arith.select %74, %98, %96 : vector<8x128xi1>, vector<8x128xf32>
    %100 = arith.addf %99, %37 : vector<8x128xf32>
    %101 = arith.addf %100, %9 : vector<8x128xf32>
    %c0_27 = arith.constant 0 : index
    %c0_28 = arith.constant 0 : index
    %102 = vector.load %arg2[%c0_27, %c0_28] : memref<8x128xf32, #tpu.memory_space<vmem>>, vector<8x128xf32>
    tpu.vector_store %arg2[%c0_27, %c0_28], %101 {strides = array<i32>} : memref<8x128xf32, #tpu.memory_space<vmem>>, vector<8x128xf32>,
    return
  }
}

</mosaic_0001>

<bundles_post_ra>
// kernel: tpu_custom_call.1
= control target key start
LH: loop header
LB: loop body
LE: loop exit
PB: predicated region body
PF: predicated region fallthrough
CT: control target
= control target key end

     0   :  { %7 = vsyncpa [#allocation3], 0  ;;  %s602_s0 = inlined_call_operand.hbm [shape: f32[8,32], index: 0, kind: input, shape index: {}]   ;;  %s603_s1 = inlined_call_operand.hbm [shape: f32[168,128], index: 1, kind: input, shape index: {}]   ;;  %s604_s2 = inlined_call_operand.hbm [shape: f32[8,128], index: 2, kind: output, shape index: {}]  }
   0x1   :  { %8 = vsyncpa [#allocation6], 0 }
   0x2   :  { %9 = vsyncpa [#allocation4], 0  ;;  %s502_s9 = smov [#allocation2]   ;;  %s503_s11 = smov [#allocation5]  }
   0x3   :  { %s16_s10 = sshll.u32 %s502_s9, 4  ;;  %s25_s12 = sshll.u32 %s503_s11, 4  ;;  %s17_s10 = int_to_ptr.vmem [resolvable:$true] %s16_s10  ;;  %s525_s12 = int_to_ptr.vmem [resolvable:$true] %s25_s12 }
   0x4   :  { %s430_s15 = scalar_lea.hbm %s602_s0, 128 }
   0x5   :  { %p431_p0 = scmp.ne.s32.totalorder %s602_s0, %s430_s15  ;;  %p434_p1 = scmp.lt.u32.totalorder %s430_s15, %s602_s0 }
   0x7   :  { %p436_p2 = pnand %p434_p1, %p431_p0 }
   0x9   :  { %439 = shalt.err (!%p436_p2)
}
   0xa   :  { %s440_s20 = scalar_lea.vmem %s17_s10, 128  ;;  %p445_p4 = scmp.lt.s32.totalorder %s17_s10, %s17_s10 }
   0xb   :  { %p441_p3 = scmp.ne.s32.totalorder %s17_s10, %s440_s20  ;;  %p446_p5 = scmp.lt.s32.totalorder %s440_s20, %s440_s20 }
   0xd   :  { %p447_p6 = por %p446_p5, %p445_p4 }
   0xf   :  { %p448_p7 = pnand %p447_p6, %p441_p3 }
  0x11   :  { %451 = shalt.err (!%p448_p7)
}
  0x12   :  { %19 = dma.hbm_to_vmem [thread:$0]  %s602_s0, 128, %s17_s10, [#allocation3]  }
  0x13   :  { %s452_s25 = scalar_lea.hbm %s603_s1, 2688 }
  0x14   :  { %p453_p8 = scmp.ne.s32.totalorder %s603_s1, %s452_s25  ;;  %p456_p9 = scmp.lt.u32.totalorder %s452_s25, %s603_s1 }
  0x16   :  { %p458_p10 = pnand %p456_p9, %p453_p8 }
  0x18   :  { %461 = shalt.err (!%p458_p10)
}
  0x19   :  { %s462_s30 = scalar_lea.vmem %s525_s12, 2688  ;;  %p467_p12 = scmp.lt.s32.totalorder %s525_s12, %s525_s12 }
  0x1a   :  { %p463_p11 = scmp.ne.s32.totalorder %s525_s12, %s462_s30  ;;  %p468_p13 = scmp.lt.s32.totalorder %s462_s30, %s462_s30 }
  0x1c   :  { %p469_p0 = por %p468_p13, %p467_p12 }
  0x1e   :  { %p470_p1 = pnand %p469_p0, %p463_p11 }
  0x20   :  { %473 = shalt.err (!%p470_p1)
}
  0x21   :  { %s504_s0 = smov 128   ;;  %s505_s3 = smov 8  }
  0x22   :  { %31 = dma.hbm_to_vmem [thread:$0]  %s603_s1, 2688, %s525_s12, [#allocation6], %s504_s0, %s504_s0, %s505_s3  }
  0x23   :  { %496 = dma.done.wait [#allocation3], 128  }
  0x24   :  { %497 = vsyncadd [#allocation3], 4294967168 }
  0x25   :  { %498 = dma.done.wait [#allocation6], 2688  }
  0x26   :  { %499 = vsyncadd [#allocation6], 4294964608  ;;  %v506_v0 = vmov 0.0|0.0   ;;  %vm507_vm0 = vmmov 0   ;;  %v508_v1 = vmov 0.0   ;;  %v38_v2 = vld [vmem:[#allocation5] sm:$0xff]  ;;  %v214_v38 = vlaneseq }
  0x27   :  { %382 = vmatprep.subr.bf16.mxu0 %v506_v0  ;;  %344 = vmatprep.mubr.msk.f32.mxu0 %vm507_vm0, %v508_v1  ;;  %v39_v3 = vld [vmem:[#allocation5 + $0x8] sm:$0xff]  ;;  %v40_v4 = vld [vmem:[#allocation5 + $0x10] sm:$0xff]  ;;  %v41_v6 = vld [vmem:[#allocation5 + $0x18] sm:$0xff]  ;;  %vm65_vm1 = vcmask 261120   ;;  %vm265_vm7 = vcmask 7168   ;;  %s509_s6 = smov [#allocation7]  }
  0x28   :  { %388 = vmatprep.subr.bf16.mxu1 %v506_v0  ;;  %379 = vmatprep.mubr.msk.f32.mxu1 %vm507_vm0, %v508_v1  ;;  %v383_v5 = vpack.c.bf16 %v39_v3, %v38_v2  ;;  %v42_v7 = vld [vmem:[#allocation5 + $0x20] sm:$0xff]  ;;  %v43_v8 = vld [vmem:[#allocation5 + $0x28] sm:$0xff]  ;;  %v44_v9 = vld [vmem:[#allocation5 + $0x30] sm:$0xff]  ;;  %v386_v11 = vpack.c.bf16 %v41_v6, %v40_v4  ;;  %v561_v39 = vand.u32 127, %v214_v38  ;;  %s300_s7 = sshll.u32 %s509_s6, 4  ;;  %s301_s7 = int_to_ptr.vmem [resolvable:$true] %s300_s7 }
  0x29   :  { %v45_v10 = vld [vmem:[#allocation5 + $0x38] sm:$0xff]  ;;  %v389_v12 = vpack.c.bf16 %v43_v8, %v42_v7  ;;  %v46_v14 = vld [vmem:[#allocation5 + $0x40] sm:$0xff]  ;;  %v47_v15 = vld [vmem:[#allocation5 + $0x48] sm:$0xff]  ;;  %s474_s8 = scalar_lea.vmem %s301_s7, 128  ;;  %p479_p3 = scmp.lt.s32.totalorder %s301_s7, %s301_s7 }
  0x2a   :  { %384 = vmatpush3.bf16.msra.mxu0 %v383_v5  ;;  %v392_v13 = vpack.c.bf16 %v45_v10, %v44_v9  ;;  %v60_v16 = vld [vmem:[#allocation2] sm:$0xff]  ;;  %v395_v17 = vpack.c.bf16 %v47_v15, %v46_v14  ;;  %v48_v18 = vld [vmem:[#allocation5 + $0x50] sm:$0xff]  ;;  %v50_v21 = vld [vmem:[#allocation5 + $0x60] sm:$0xff]  ;;  %vm216_vm2 = vcmp.ge.s32.totalorder %v561_v39, 16  ;;  %vm217_vm3 = vcmp.lt.s32.totalorder %v561_v39, 32  ;;  %p475_p2 = scmp.ne.s32.totalorder %s301_s7, %s474_s8  ;;  %p480_p4 = scmp.lt.s32.totalorder %s474_s8, %s474_s8 }
  0x2b   :  { %385 = vmatprep.subr.bf16.mxu0 %v506_v0  ;;  %390 = vmatpush3.bf16.msra.mxu1 %v389_v12  ;;  %v49_v19 = vld [vmem:[#allocation5 + $0x58] sm:$0xff]  ;;  %v51_v22 = vld [vmem:[#allocation5 + $0x68] sm:$0xff]  ;;  %v52_v24 = vld [vmem:[#allocation5 + $0x70] sm:$0xff]  ;;  %v313_v53 = vadd.s32 4294967280, %v561_v39  ;;  %vm219_vm9 = vcmp.eq.s32.totalorder %v561_v39, 0  ;;  %vm285_vm11 = vcmp.eq.s32.totalorder %v561_v39, 4 }
  0x2c   :  { %391 = vmatprep.subr.bf16.mxu1 %v506_v0  ;;  %v398_v20 = vpack.c.bf16 %v49_v19, %v48_v18  ;;  %v401_v23 = vpack.c.bf16 %v51_v22, %v50_v21  ;;  %v53_v25 = vld [vmem:[#allocation5 + $0x78] sm:$0xff]  ;;  %v54_v27 = vld [vmem:[#allocation5 + $0x80] sm:$0xff]  ;;  %v55_v28 = vld [vmem:[#allocation5 + $0x88] sm:$0xff]  ;;  %vm284_vm12 = vcmp.eq.s32.totalorder %v561_v39, 3  ;;  %vm282_vm13 = vcmp.eq.s32.totalorder %v561_v39, 2  ;;  %p481_p5 = por %p480_p4, %p479_p3 }
  0x2d   :  { %v404_v26 = vpack.c.bf16 %v53_v25, %v52_v24  ;;  %v407_v29 = vpack.c.bf16 %v55_v28, %v54_v27  ;;  %v56_v30 = vld [vmem:[#allocation5 + $0x90] sm:$0xff]  ;;  %v57_v31 = vld [vmem:[#allocation5 + $0x98] sm:$0xff]  ;;  %v310_v33 = vld [vmem:[#allocation5 + $0xa0] ss:$0 sm:$0xff]  ;;  %vm281_vm14 = vcmp.eq.s32.totalorder %v561_v39, 1 }
  0x2e   :  { %387 = vmatpush3.bf16.msra.mxu0 %v386_v11  ;;  %v410_v32 = vpack.c.bf16 %v57_v31, %v56_v30  ;;  %v312_v40 = vld [vmem:[#allocation5 + $0xa1] ss:$0 sm:$0xff]  ;;  %vm565_vm4 = vmand %vm216_vm2, %vm217_vm3  ;;  %p482_p6 = pnand %p481_p5, %p475_p2 }
  0x2f   :  { %393 = vmatpush3.bf16.msra.mxu1 %v392_v13 }
  0x30   :  { %394 = vmatprep.subr.bf16.mxu1 %v506_v0 }
  0x31   :  { %345 = vmatmul.mubr.msk.f32.vlgmr.msra.gmra.mrb[0].mxu0 %vm65_vm1, %v60_v16 }
  0x33   :  { %396 = vmatpush3.bf16.msra.mxu1 %v395_v17 }
  0x34   :  { %397 = vmatprep.subr.bf16.mxu1 %v506_v0 }
  0x37   :  { %399 = vmatpush3.bf16.msra.mxu1 %v398_v20 }
  0x38   :  { %400 = vmatprep.subr.bf16.mxu1 %v506_v0 }
  0x3b   :  { %402 = vmatpush3.bf16.msra.mxu1 %v401_v23 }
  0x3c   :  { %403 = vmatprep.subr.bf16.mxu1 %v506_v0 }
  0x3f   :  { %405 = vmatpush3.bf16.msra.mxu1 %v404_v26 }
  0x40   :  { %406 = vmatprep.subr.bf16.mxu1 %v506_v0 }
  0x43   :  { %408 = vmatpush3.bf16.msra.mxu1 %v407_v29 }
  0x44   :  { %409 = vmatprep.subr.bf16.mxu1 %v506_v0 }
  0x47   :  { %411 = vmatpush3.bf16.msra.mxu1 %v410_v32 }
 0x104   :  { %v135_v34 = vpop.f32.mrb[0].mxu0 }
 0x105   :  { %v556_v35 = vadd.f32 %v310_v33, %v135_v34  ;;  %v346_v36 = vpop.f32.mrb[1].mxu0 }
 0x107   :  { %v139_v37 = vmax.f32 %v556_v35, 0.0 }
 0x109   :  { %380 = vmatmul.mubr.f32.vlgmr.msra.gmra.mrb[0].mxu1 %v139_v37 }
 0x1dc   :  { %v210_v41 = vpop.f32.mrb[0].mxu1 }
 0x1dd   :  { %v211_v43 = vadd.f32 %v312_v40, %v210_v41  ;;  %v381_v44 = vpop.f32.mrb[1].mxu1 }
 0x1df   :  { %v223_v45 = vsel %vm565_vm4, %v211_v43, -1e+30  ;;  %v220_v6 = vsel %vm219_vm9, %v211_v43, 0.0 }
 0x1e0   :  { %224 = vmax.xlane.f32.xlu0 %v223_v45 }
 0x26d   :  { %v225_v46 = vpop.xlane.xlu0 %224 }
 0x26e   :  { %v226_v47 = vsub.f32 %v223_v45, %v225_v46  ;;  %vm237_vm5 = vcmp.eq.f32.partialorder %v223_v45, %v225_v46 }
 0x26f   :  { %vm238_vm6 = vmand %vm565_vm4, %vm237_vm5 }
 0x270   :  { %v227_v48 = vmul.f32 1.442695, %v226_v47  ;;  %v240_v58 = vsel %vm238_vm6, %v313_v53, 16 }
 0x271   :  { %v242_v60 = vshra.s32 %v240_v58, 16  ;;  %v241_v0 = vand.u32 65535, %v240_v58 }
 0x272   :  { %422 = vpow2.f32 %v227_v48 }
 0x273   :  { %v244_v62 = vcvt.s32.f32 %v242_v60  ;;  %v243_v4 = vcvt.s32.f32 %v241_v0 }
 0x27c   :  { %v423_v49 = vpop.eup %422 }
 0x27d   :  { %v229_v50 = vsel %vm565_vm4, %v423_v49, 0.0 }
 0x27e   :  { %230 = vadd.xlane.f32.xlu0 %v229_v50 }
 0x30b   :  { %v231_v51 = vpop.xlane.xlu0 %230 }
 0x30c   :  { %424 = vrcp.f32 %v231_v51 }
 0x30d   :  { %426 = vlog2.f32 %v231_v51 }
 0x316   :  { %v425_v52 = vpop.eup %424 }
 0x317   :  { %v427_v54 = vpop.eup %426  ;;  %v233_v56 = vmul.f32 %v425_v52, %v229_v50 }
 0x318   :  { %v235_v55 = vmul.f32 0.6931472, %v427_v54 }
 0x31a   :  { %v236_v57 = vsub.f32 %v226_v47, %v235_v55 }
 0x31c   :  { %v260_v59 = vmul.f32 %v236_v57, %v233_v56 }
 0x31e   :  { %v261_v61 = vsel %vm565_vm4, %v260_v59, 0.0 }
 0x31f   :  { %262 = vadd.xlane.f32.xlu1 %v261_v61 }
 0x323   :  { %245 = vmin.xlane.f32.xlu1 %v244_v62 }
 0x3ac   :  { %v263_v63 = vpop.xlane.xlu1 %262 }
 0x3ad   :  { %v264_v1 = vsub.f32 0.0, %v263_v63 }
 0x3af   :  { %v266_v2 = vsel %vm265_vm7, %v264_v1, 0.0 }
 0x3b0   :  { %267 = vadd.xlane.f32.xlu0 %v266_v2  ;;  %v246_v3 = vpop.xlane.xlu1 %245 }
 0x3b1   :  { %vm247_vm8 = vcmp.eq.f32.partialorder %v244_v62, %v246_v3  ;;  %v252_v7 = vcvt.f32.s32 %v246_v3 }
 0x3b2   :  { %v248_v5 = vsel %vm247_vm8, %v243_v4, inf }
 0x3b3   :  { %249 = vmin.xlane.f32.xlu1 %v248_v5  ;;  %v253_v12 = vshll.u32 %v252_v7, 16 }
 0x3b7   :  { %221 = vadd.xlane.f32.xlu1 %v220_v6 }
 0x43d   :  { %v268_v8 = vpop.xlane.xlu0 %267 }
 0x43e   :  { %v269_v9 = vrot.slane %v268_v8, 4 }
 0x440   :  { %v270_v10 = vadd.f32 %v269_v9, %v268_v8  ;;  %v250_v11 = vpop.xlane.xlu1 %249 }
 0x441   :  { %v251_v13 = vcvt.f32.s32 %v250_v11 }
 0x442   :  { %v271_v14 = vrot.slane %v270_v10, 2 }
 0x443   :  { %v254_v15 = vadd.s32 %v253_v12, %v251_v13 }
 0x444   :  { %v272_v16 = vadd.f32 %v271_v14, %v270_v10  ;;  %v222_v30 = vpop.xlane.xlu1 %221 }
 0x445   :  { %v255_v17 = vadd.s32 16, %v254_v15  ;;  %v283_v27 = vcvt.s32.f32 %v254_v15 }
 0x446   :  { %v273_v18 = vrot.slane %v272_v16, 1 }
 0x447   :  { %vm256_vm10 = vcmp.eq.s32.totalorder %v561_v39, %v255_v17 }
 0x448   :  { %v257_v19 = vsel %vm256_vm10, %v236_v57, 0.0  ;;  %v274_v20 = vadd.f32 %v273_v18, %v272_v16 }
 0x449   :  { %258 = vadd.xlane.f32.xlu0 %v257_v19 }
 0x44a   :  { %412 = vpush %v274_v20 }
 0x47b   :  { %s413_s1 = spop %412 }
 0x47c   :  { %v276_v21 = vstv %s413_s1 }
 0x47d   :  { %v278_v22 = vmul.f32 0.125, %v276_v21 }
 0x47f   :  { %v279_v23 = vmul.f32 1.442695, %v278_v22 }
 0x481   :  { %428 = vpow2.f32 %v279_v23 }
 0x48b   :  { %v429_v24 = vpop.eup %428 }
 0x48c   :  { %v286_v25 = vsel %vm285_vm11, %v429_v24, 0.0 }
 0x48d   :  { %v287_v26 = vsel %vm284_vm12, %v278_v22, %v286_v25 }
 0x48e   :  { %v288_v28 = vsel %vm282_vm13, %v283_v27, %v287_v26 }
 0x4d6   :  { %v259_v29 = vpop.xlane.xlu0 %258 }
 0x4d7   :  { %v289_v31 = vsel %vm281_vm14, %v259_v29, %v288_v28 }
 0x4d8   :  { %v290_v32 = vsel %vm219_vm9, %v222_v30, %v289_v31 }
 0x4d9   :  { %v291_v33 = vadd.f32 %v290_v32, %v233_v56 }
 0x4db   :  { %v292_v34 = vadd.f32 %v291_v33, %v139_v37 }
 0x4dd   :  { %293 = vst [vmem:[#allocation7] sm:$0xff] %v292_v34 }
 0x4de   :  { %485 = shalt.err (!%p482_p6)
}
 0x4df   :  { %s486_s11 = scalar_lea.hbm %s604_s2, 128 }
 0x4e0   :  { %p487_p7 = scmp.ne.s32.totalorder %s604_s2, %s486_s11  ;;  %p490_p8 = scmp.lt.u32.totalorder %s486_s11, %s604_s2 }
 0x4e2   :  { %p492_p9 = pnand %p490_p8, %p487_p7 }
 0x4e4   :  { %495 = shalt.err (!%p492_p9)
}
 0x4e5   :  { %303 = dma.vmem_to_hbm [thread:$0]  %s301_s7, 128, %s604_s2, [#allocation4]  }
 0x4e6   :  { %500 = dma.done.wait [#allocation4], 128  }
 0x4e7   :  { %501 = vsyncadd [#allocation4], 4294967168 }
 0x4e8   :  { %307 = vsyncpa [#allocation3], 1 }
 0x4e9   :  { %308 = vsyncpa [#allocation6], 1 }
 0x4ea   :  { %309 = vsyncpa [#allocation4], 1 }

</bundles_post_ra>
